<compile_context>
chip_gen: v7x
topology: tpu7x:2x2x1
jax: 0.10.0
libtpu: 0.0.40
codegen_flags: <defaults>
</compile_context>

<pallas_src>
import functools

import jax
import jax.numpy as jnp
from jax.experimental import pallas as pl
from jax.experimental.pallas import tpu as pltpu


def _round_up(x, m):
    return (x + m - 1) // m * m


def _is_v7x():
    """Trace-time check: are we on a 2-TensorCore (v7x-class) chip?"""
    try:
        kind = jax.devices()[0].device_kind.lower()
        return "v7" in kind
    except Exception:  # pragma: no cover - be conservative on unknown devices
        return False


def _mlp_kernel(x_ref,
                w1_ref, b1_ref,
                w2_ref, b2_ref,
                w3_ref, b3_ref,
                w4_ref, b4_ref,
                o_ref):
    # x arrives already bf16; MXU matmuls accumulate in f32, bias-add and ReLU
    # stay in f32 (friendly to v5e's f32-only VPU).
    h = jnp.dot(x_ref[...], w1_ref[...],
                preferred_element_type=jnp.float32) + b1_ref[...]
    h = jnp.maximum(h, 0.0)

    h = jnp.dot(h.astype(jnp.bfloat16), w2_ref[...],
                preferred_element_type=jnp.float32) + b2_ref[...]
    h = jnp.maximum(h, 0.0)

    h = jnp.dot(h.astype(jnp.bfloat16), w3_ref[...],
                preferred_element_type=jnp.float32) + b3_ref[...]
    h = jnp.maximum(h, 0.0)

    out = jnp.dot(h.astype(jnp.bfloat16), w4_ref[...],
                  preferred_element_type=jnp.float32) + b4_ref[...]
    o_ref[...] = out.astype(o_ref.dtype)


@functools.partial(jax.jit, static_argnames=("block_b",))
def net_forward(x, params, block_b=512):
    """Forward pass of Net.  x: [B, in_feature] (any float dtype).

    params: list of 4 (w, b) pairs with w: [fan_in, fan_out] (bf16),
            b: [1, fan_out] (f32).  Returns [b_pad, out_feature] f32
            (batch-padded; caller slices back to B rows).
    """
    (w1, b1), (w2, b2), (w3, b3), (w4, b4) = params
    B, in_f = x.shape
    out_f = w4.shape[1]

    # ---- batch tiling: minimize padding, tile a multiple of 16 (bf16 rows).
    n_steps = max(1, pl.cdiv(B, block_b))
    tile_b = _round_up(pl.cdiv(B, n_steps), 16)
    # v7x-only: give both TensorCores work, but keep per-core M >= 256 so the
    # 2x256x256 MXU stays filled.  On single-TC v5e/v6e this split is skipped.
    if n_steps == 1 and tile_b >= 512 and _is_v7x():
        n_steps = 2
        tile_b = _round_up(pl.cdiv(B, n_steps), 16)
    b_pad = n_steps * tile_b

    # ---- feed the MXU bf16 operands: cast x once in the wrapper.
    x = x.astype(jnp.bfloat16)
    if b_pad != B:
        x = jnp.pad(x, ((0, b_pad - B), (0, 0)))

    grid = (n_steps,)

    # Full-array specs for all parameters (small; stay resident in VMEM).
    def full_spec(arr):
        nd = arr.ndim
        return pl.BlockSpec(arr.shape, lambda i, _nd=nd: (0,) * _nd)

    # Advisory cost estimate for the XLA scheduler.
    flops = 2 * b_pad * (in_f * 256 + 256 * 512 + 512 * 256 + 256 * out_f)
    weight_bytes = sum(int(w.size) * w.dtype.itemsize + int(b.size) * b.dtype.itemsize
                       for (w, b) in params)
    bytes_accessed = (b_pad * in_f * 2          # bf16 input stream
                      + b_pad * out_f * 4       # f32 output stream
                      + weight_bytes)
    cost = pl.CostEstimate(flops=flops, transcendentals=0,
                           bytes_accessed=bytes_accessed)

    out = pl.pallas_call(
        _mlp_kernel,
        out_shape=jax.ShapeDtypeStruct((b_pad, out_f), jnp.float32),
        grid_spec=pltpu.PrefetchScalarGridSpec(
            num_scalar_prefetch=0,
            grid=grid,
            in_specs=[
                pl.BlockSpec((tile_b, in_f), lambda i: (i, 0)),
                full_spec(w1), full_spec(b1),
                full_spec(w2), full_spec(b2),
                full_spec(w3), full_spec(b3),
                full_spec(w4), full_spec(b4),
            ],
            # Output block's last dim equals the full array dim -> legal even
            # when out_feature is not a multiple of 128; avoids 4x padded
            # writeback for small out_feature.
            out_specs=pl.BlockSpec((tile_b, out_f), lambda i: (i, 0)),
        ),
        compiler_params=pltpu.CompilerParams(
            dimension_semantics=("parallel",),
            vmem_limit_bytes=32 * 1024 * 1024,  # safe on v5e/v6e/v7x
        ),
        cost_estimate=cost,
    )(x, w1, b1, w2, b2, w3, b3, w4, b4)

    return out  # batch-padded; caller slices


def net_apply(x, params, block_b=512):
    """Convenience wrapper that strips batch padding."""
    B = x.shape[0]
    y = net_forward(x, params, block_b=block_b)
    return y[:B]


def init_params(key, in_feature, out_feature):
    """Deterministic init mimicking torch.nn.Linear (uniform +/- 1/sqrt(fan_in)).

    Weights stored as [fan_in, fan_out] in bf16 (MXU operands); biases as
    [1, fan_out] in f32.  No column padding on the last layer."""
    dims = [(in_feature, 256), (256, 512), (512, 256), (256, out_feature)]
    params = []
    for fan_in, fan_out in dims:
        key, kw, kb = jax.random.split(key, 3)
        bound = 1.0 / (fan_in ** 0.5)
        w = jax.random.uniform(kw, (fan_in, fan_out), jnp.float32, -bound, bound)
        b = jax.random.uniform(kb, (1, fan_out), jnp.float32, -bound, bound)
        params.append((w.astype(jnp.bfloat16), b.astype(jnp.float32)))
    return params


def reference_forward(x, params):
    """Pure-JAX reference mirroring the kernel's bf16-operand / f32-accum math."""
    h = x.astype(jnp.bfloat16)
    n = len(params)
    for idx, (w, b) in enumerate(params):
        h = jnp.dot(h, w, preferred_element_type=jnp.float32) + b
        if idx < n - 1:
            h = jnp.maximum(h, 0.0)
            h = h.astype(jnp.bfloat16)
    return h


if __name__ == "__main__":
    key = jax.random.PRNGKey(0)
    in_feature, out_feature = 64, 32
    batch = 8  # small demo batch; wrapper handles padding / tiling

    kx, kp = jax.random.split(key)
    x = jax.random.normal(kx, (batch, in_feature), jnp.float32)
    params = init_params(kp, in_feature, out_feature)

    out = net_apply(x, params, block_b=512)
    out = jax.block_until_ready(out)

    ref = reference_forward(x, params)
    assert out.shape == (batch, out_feature), out.shape
    assert jnp.allclose(out, ref, atol=1e-2, rtol=1e-2), "mismatch vs reference"

    print("KERNEL_OK")
</pallas_src>

<mosaic_0001>
module attributes {stable_mosaic.version = 11 : i64} {
  func.func @_mlp_kernel(%arg0: i32, %arg1: memref<16x64xbf16, #tpu.memory_space<vmem>>, %arg2: memref<64x256xbf16, #tpu.memory_space<vmem>>, %arg3: memref<1x256xf32, #tpu.memory_space<vmem>>, %arg4: memref<256x512xbf16, #tpu.memory_space<vmem>>, %arg5: memref<1x512xf32, #tpu.memory_space<vmem>>, %arg6: memref<512x256xbf16, #tpu.memory_space<vmem>>, %arg7: memref<1x256xf32, #tpu.memory_space<vmem>>, %arg8: memref<256x32xbf16, #tpu.memory_space<vmem>>, %arg9: memref<1x32xf32, #tpu.memory_space<vmem>>, %arg10: memref<16x32xf32, #tpu.memory_space<vmem>>) attributes {dimension_semantics = [#tpu.dimension_semantics<parallel>], iteration_bounds = array<i64: 1>, scalar_prefetch = 0 : i64, scratch_operands = 0 : i64, tpu.core_type = #tpu.core_type<tc>, window_params = [{transform_indices = @transform_0, window_bounds = array<i64: 16, 64>}, {pipeline_mode = #tpu.pipeline_mode<synchronous>, transform_indices = @transform_1, window_bounds = array<i64: 64, 256>}, {pipeline_mode = #tpu.pipeline_mode<synchronous>, transform_indices = @transform_2, window_bounds = array<i64: 1, 256>}, {pipeline_mode = #tpu.pipeline_mode<synchronous>, transform_indices = @transform_3, window_bounds = array<i64: 256, 512>}, {pipeline_mode = #tpu.pipeline_mode<synchronous>, transform_indices = @transform_4, window_bounds = array<i64: 1, 512>}, {pipeline_mode = #tpu.pipeline_mode<synchronous>, transform_indices = @transform_5, window_bounds = array<i64: 512, 256>}, {pipeline_mode = #tpu.pipeline_mode<synchronous>, transform_indices = @transform_6, window_bounds = array<i64: 1, 256>}, {pipeline_mode = #tpu.pipeline_mode<synchronous>, transform_indices = @transform_7, window_bounds = array<i64: 256, 32>}, {pipeline_mode = #tpu.pipeline_mode<synchronous>, transform_indices = @transform_8, window_bounds = array<i64: 1, 32>}, {transform_indices = @transform_9, window_bounds = array<i64: 16, 32>}]} {
    %c0 = arith.constant 0 : index
    %c0_0 = arith.constant 0 : index
    %0 = vector.load %arg1[%c0, %c0_0] : memref<16x64xbf16, #tpu.memory_space<vmem>>, vector<16x64xbf16>
    %c0_1 = arith.constant 0 : index
    %c0_2 = arith.constant 0 : index
    %1 = vector.load %arg2[%c0_1, %c0_2] : memref<64x256xbf16, #tpu.memory_space<vmem>>, vector<64x256xbf16>
    %cst = arith.constant dense<0.000000e+00> : vector<16x256xf32>
    %2 = tpu.matmul %0, %1, %cst {dimension_numbers = #tpu.dot_dimension_numbers<[1], [0], [0], [1], [0, 0, 1, 1], [], []>} : vector<16x64xbf16>, vector<64x256xbf16>, vector<16x256xf32> -> vector<16x256xf32>
    %c0_3 = arith.constant 0 : index
    %c0_4 = arith.constant 0 : index
    %3 = vector.load %arg3[%c0_3, %c0_4] : memref<1x256xf32, #tpu.memory_space<vmem>>, vector<1x256xf32>
    %4 = vector.broadcast %3 : vector<1x256xf32> to vector<16x256xf32>
    %5 = arith.addf %2, %4 : vector<16x256xf32>
    %cst_5 = arith.constant 0.000000e+00 : f32
    %6 = vector.broadcast %cst_5 : f32 to vector<16x256xf32>
    %7 = arith.maximumf %5, %6 : vector<16x256xf32>
    %8 = arith.truncf %7 : vector<16x256xf32> to vector<16x256xbf16>
    %c0_6 = arith.constant 0 : index
    %c0_7 = arith.constant 0 : index
    %9 = vector.load %arg4[%c0_6, %c0_7] : memref<256x512xbf16, #tpu.memory_space<vmem>>, vector<256x512xbf16>
    %cst_8 = arith.constant dense<0.000000e+00> : vector<16x512xf32>
    %10 = tpu.matmul %8, %9, %cst_8 {dimension_numbers = #tpu.dot_dimension_numbers<[1], [0], [0], [1], [0, 0, 1, 1], [], []>} : vector<16x256xbf16>, vector<256x512xbf16>, vector<16x512xf32> -> vector<16x512xf32>
    %c0_9 = arith.constant 0 : index
    %c0_10 = arith.constant 0 : index
    %11 = vector.load %arg5[%c0_9, %c0_10] : memref<1x512xf32, #tpu.memory_space<vmem>>, vector<1x512xf32>
    %12 = vector.broadcast %11 : vector<1x512xf32> to vector<16x512xf32>
    %13 = arith.addf %10, %12 : vector<16x512xf32>
    %cst_11 = arith.constant 0.000000e+00 : f32
    %14 = vector.broadcast %cst_11 : f32 to vector<16x512xf32>
    %15 = arith.maximumf %13, %14 : vector<16x512xf32>
    %16 = arith.truncf %15 : vector<16x512xf32> to vector<16x512xbf16>
    %c0_12 = arith.constant 0 : index
    %c0_13 = arith.constant 0 : index
    %17 = vector.load %arg6[%c0_12, %c0_13] : memref<512x256xbf16, #tpu.memory_space<vmem>>, vector<512x256xbf16>
    %cst_14 = arith.constant dense<0.000000e+00> : vector<16x256xf32>
    %18 = tpu.matmul %16, %17, %cst_14 {dimension_numbers = #tpu.dot_dimension_numbers<[1], [0], [0], [1], [0, 0, 1, 1], [], []>} : vector<16x512xbf16>, vector<512x256xbf16>, vector<16x256xf32> -> vector<16x256xf32>
    %c0_15 = arith.constant 0 : index
    %c0_16 = arith.constant 0 : index
    %19 = vector.load %arg7[%c0_15, %c0_16] : memref<1x256xf32, #tpu.memory_space<vmem>>, vector<1x256xf32>
    %20 = vector.broadcast %19 : vector<1x256xf32> to vector<16x256xf32>
    %21 = arith.addf %18, %20 : vector<16x256xf32>
    %cst_17 = arith.constant 0.000000e+00 : f32
    %22 = vector.broadcast %cst_17 : f32 to vector<16x256xf32>
    %23 = arith.maximumf %21, %22 : vector<16x256xf32>
    %24 = arith.truncf %23 : vector<16x256xf32> to vector<16x256xbf16>
    %c0_18 = arith.constant 0 : index
    %c0_19 = arith.constant 0 : index
    %25 = vector.load %arg8[%c0_18, %c0_19] : memref<256x32xbf16, #tpu.memory_space<vmem>>, vector<256x32xbf16>
    %cst_20 = arith.constant dense<0.000000e+00> : vector<16x32xf32>
    %26 = tpu.matmul %24, %25, %cst_20 {dimension_numbers = #tpu.dot_dimension_numbers<[1], [0], [0], [1], [0, 0, 1, 1], [], []>} : vector<16x256xbf16>, vector<256x32xbf16>, vector<16x32xf32> -> vector<16x32xf32>
    %c0_21 = arith.constant 0 : index
    %c0_22 = arith.constant 0 : index
    %27 = vector.load %arg9[%c0_21, %c0_22] : memref<1x32xf32, #tpu.memory_space<vmem>>, vector<1x32xf32>
    %28 = vector.broadcast %27 : vector<1x32xf32> to vector<16x32xf32>
    %29 = arith.addf %26, %28 : vector<16x32xf32>
    %c0_23 = arith.constant 0 : index
    %c0_24 = arith.constant 0 : index
    %30 = vector.load %arg10[%c0_23, %c0_24] : memref<16x32xf32, #tpu.memory_space<vmem>>, vector<16x32xf32>
    tpu.vector_store %arg10[%c0_23, %c0_24], %29 {strides = array<i32>} : memref<16x32xf32, #tpu.memory_space<vmem>>, vector<16x32xf32>,
    return
  }
  func.func @transform_0(%arg0: i32) -> (i32, i32) {
    %c0_i32 = arith.constant 0 : i32
    %c0_i32_0 = arith.constant 0 : i32
    return %arg0, %c0_i32 : i32, i32
  }
  func.func @transform_1(%arg0: i32) -> (i32, i32) {
    %c0_i32 = arith.constant 0 : i32
    %c0_i32_0 = arith.constant 0 : i32
    %c0_i32_1 = arith.constant 0 : i32
    return %c0_i32, %c0_i32_0 : i32, i32
  }
  func.func @transform_2(%arg0: i32) -> (i32, i32) {
    %c0_i32 = arith.constant 0 : i32
    %c0_i32_0 = arith.constant 0 : i32
    %c0_i32_1 = arith.constant 0 : i32
    return %c0_i32, %c0_i32_0 : i32, i32
  }
  func.func @transform_3(%arg0: i32) -> (i32, i32) {
    %c0_i32 = arith.constant 0 : i32
    %c0_i32_0 = arith.constant 0 : i32
    %c0_i32_1 = arith.constant 0 : i32
    return %c0_i32, %c0_i32_0 : i32, i32
  }
  func.func @transform_4(%arg0: i32) -> (i32, i32) {
    %c0_i32 = arith.constant 0 : i32
    %c0_i32_0 = arith.constant 0 : i32
    %c0_i32_1 = arith.constant 0 : i32
    return %c0_i32, %c0_i32_0 : i32, i32
  }
  func.func @transform_5(%arg0: i32) -> (i32, i32) {
    %c0_i32 = arith.constant 0 : i32
    %c0_i32_0 = arith.constant 0 : i32
    %c0_i32_1 = arith.constant 0 : i32
    return %c0_i32, %c0_i32_0 : i32, i32
  }
  func.func @transform_6(%arg0: i32) -> (i32, i32) {
    %c0_i32 = arith.constant 0 : i32
    %c0_i32_0 = arith.constant 0 : i32
    %c0_i32_1 = arith.constant 0 : i32
    return %c0_i32, %c0_i32_0 : i32, i32
  }
  func.func @transform_7(%arg0: i32) -> (i32, i32) {
    %c0_i32 = arith.constant 0 : i32
    %c0_i32_0 = arith.constant 0 : i32
    %c0_i32_1 = arith.constant 0 : i32
    return %c0_i32, %c0_i32_0 : i32, i32
  }
  func.func @transform_8(%arg0: i32) -> (i32, i32) {
    %c0_i32 = arith.constant 0 : i32
    %c0_i32_0 = arith.constant 0 : i32
    %c0_i32_1 = arith.constant 0 : i32
    return %c0_i32, %c0_i32_0 : i32, i32
  }
  func.func @transform_9(%arg0: i32) -> (i32, i32) {
    %c0_i32 = arith.constant 0 : i32
    %c0_i32_0 = arith.constant 0 : i32
    return %arg0, %c0_i32 : i32, i32
  }
}

</mosaic_0001>

<bundles_post_ra>
// kernel: net_forward.1
= control target key start
LH: loop header
LB: loop body
LE: loop exit
PB: predicated region body
PF: predicated region fallthrough
CT: control target
= control target key end

     0   :  { %14 = vsyncpa [#allocation3], 0  ;;  %s2070_s0 = inlined_call_operand.vmem [shape: bf16[16,64], index: 0, kind: input, shape index: {}]   ;;  %s2071_s1 = inlined_call_operand.vmem [shape: bf16[64,256], index: 1, kind: input, shape index: {}]   ;;  %s2072_s2 = inlined_call_operand.vmem [shape: f32[1,256], index: 2, kind: input, shape index: {}]   ;;  %s2073_s3 = inlined_call_operand.hbm [shape: bf16[256,512], index: 3, kind: input, shape index: {}]   ;;  %s2074_s4 = inlined_call_operand.vmem [shape: f32[1,512], index: 4, kind: input, shape index: {}]   ;;  %s2075_s5 = inlined_call_operand.hbm [shape: bf16[512,256], index: 5, kind: input, shape index: {}]   ;;  %s2076_s6 = inlined_call_operand.vmem [shape: f32[1,256], index: 6, kind: input, shape index: {}]   ;;  %s2077_s7 = inlined_call_operand.vmem [shape: bf16[256,32], index: 7, kind: input, shape index: {}]   ;;  %s2078_s8 = inlined_call_operand.vmem [shape: f32[1,32], index: 8, kind: input, shape index: {}]   ;;  %s2079_s9 = inlined_call_operand.hbm [shape: f32[16,32], index: 9, kind: output, shape index: {}]  }
   0x1   :  { %15 = vsyncpa [#allocation6], 0 }
   0x2   :  { %16 = vsyncpa [#allocation4], 0  ;;  %s1857_s30 = smov [#allocation2]   ;;  %s1785_s13 = scalar_lea.hbm %s2073_s3, 8192 }
   0x3   :  { %s28_s10 = sshll.u32 %s1857_s30, 4  ;;  %p1786_p0 = scmp.ne.s32.totalorder %s2073_s3, %s1785_s13  ;;  %s29_s10 = int_to_ptr.vmem [resolvable:$true] %s28_s10 }
   0x4   :  { %p1789_p1 = scmp.lt.u32.totalorder %s1785_s13, %s2073_s3 }
   0x6   :  { %p1791_p2 = pnand %p1789_p1, %p1786_p0 }
   0x8   :  { %1794 = shalt.err (!%p1791_p2)
}
   0x9   :  { %s1795_s18 = scalar_lea.vmem %s29_s10, 8192  ;;  %p1800_p4 = scmp.lt.s32.totalorder %s29_s10, %s29_s10 }
   0xa   :  { %p1796_p3 = scmp.ne.s32.totalorder %s29_s10, %s1795_s18  ;;  %p1801_p5 = scmp.lt.s32.totalorder %s1795_s18, %s1795_s18 }
   0xc   :  { %p1802_p6 = por %p1801_p5, %p1800_p4 }
   0xe   :  { %p1803_p7 = pnand %p1802_p6, %p1796_p3 }
  0x10   :  { %1806 = shalt.err (!%p1803_p7)
}
  0x11   :  { %s1858_s19 = smov 256   ;;  %s1859_s20 = smov 16  }
  0x12   :  { %34 = dma.hbm_to_vmem [thread:$0]  %s2073_s3, 8192, %s29_s10, [#allocation3], %s1858_s19, %s1858_s19, %s1859_s20  }
  0x13   :  { %s1860_s23 = smov [#allocation5]   ;;  %s1807_s27 = scalar_lea.hbm %s2075_s5, 8192 }
  0x14   :  { %s42_s24 = sshll.u32 %s1860_s23, 4  ;;  %p1808_p8 = scmp.ne.s32.totalorder %s2075_s5, %s1807_s27  ;;  %s43_s24 = int_to_ptr.vmem [resolvable:$true] %s42_s24 }
  0x15   :  { %p1811_p9 = scmp.lt.u32.totalorder %s1807_s27, %s2075_s5 }
  0x17   :  { %p1813_p10 = pnand %p1811_p9, %p1808_p8 }
  0x19   :  { %1816 = shalt.err (!%p1813_p10)
}
  0x1a   :  { %s1817_s12 = scalar_lea.vmem %s43_s24, 8192  ;;  %p1822_p12 = scmp.lt.s32.totalorder %s43_s24, %s43_s24 }
  0x1b   :  { %p1818_p11 = scmp.ne.s32.totalorder %s43_s24, %s1817_s12  ;;  %p1823_p13 = scmp.lt.s32.totalorder %s1817_s12, %s1817_s12 }
  0x1d   :  { %p1824_p0 = por %p1823_p13, %p1822_p12 }
  0x1f   :  { %p1825_p1 = pnand %p1824_p0, %p1818_p11 }
  0x21   :  { %1828 = shalt.err (!%p1825_p1)
}
  0x22   :  { %s1861_s3 = smov 128   ;;  %s1862_s10 = smov 8  }
  0x23   :  { %48 = dma.hbm_to_vmem [thread:$0]  %s2075_s5, 8192, %s43_s24, [#allocation6], %s1861_s3, %s1861_s3, %s1862_s10  }
  0x24   :  { %1851 = dma.done.wait [#allocation3], 8192  }
  0x25   :  { %1852 = vsyncadd [#allocation3], 4294959104 }
  0x26   :  { %1853 = dma.done.wait [#allocation6], 8192  }
  0x27   :  { %1854 = vsyncadd [#allocation6], 4294959104  ;;  %v1863_v0 = vmov 0   ;;  %v1564_v1 = vld [vmem:[%s2071_s1 + $0x4] ss:$8 sps:$4 sm:$0xff]   ;;  %vm129_vm0 = vcmask 523264  }
  0x28   :  { %165 = vmatprep.mubr.bf16.mxu1 %v1863_v0  ;;  %v1566_v2 = vld [vmem:[%s2071_s1] ss:$8 sps:$4 sm:$0xff]   ;;  %133 = vmatprep.subr.bf16.mxu1 %v1564_v1  ;;  %v1567_v3 = vld [vmem:[%s2071_s1 + $0x14] ss:$8 sps:$4 sm:$0xff]   ;;  %v1569_v4 = vld [vmem:[%s2071_s1 + $0x10] ss:$8 sps:$4 sm:$0xff]   ;;  %v74_v0 = vlaneseq }
  0x29   :  { %134 = vmatpush1.bf16.msra.mxu1 %v1566_v2  ;;  %v1570_v5 = vld [vmem:[%s2071_s1 + $0x24] ss:$8 sps:$4 sm:$0xff]   ;;  %v1572_v6 = vld [vmem:[%s2071_s1 + $0x20] ss:$8 sps:$4 sm:$0xff]   ;;  %v1573_v9 = vld [vmem:[%s2071_s1 + $0x34] ss:$8 sps:$4 sm:$0xff]  }
  0x2a   :  { %135 = vmatprep.subr.bf16.mxu1 %v1567_v3  ;;  %v1577_v7 = vld [vmem:[#allocation2 + $0x4] ss:$16 sps:$4 sm:$0xff]   ;;  %v1579_v8 = vld [vmem:[#allocation2] ss:$16 sps:$4 sm:$0xff]   ;;  %v1627_v42 = vld [vmem:[#allocation2 + $0xc] ss:$16 sps:$4 sm:$0xff]  }
  0x2b   :  { %v1580_v10 = vld [vmem:[#allocation2 + $0x24] ss:$16 sps:$4 sm:$0xff]   ;;  %588 = vmatprep.subr.bf16.mxu0 %v1577_v7  ;;  %v1582_v11 = vld [vmem:[#allocation2 + $0x20] ss:$16 sps:$4 sm:$0xff]   ;;  %v1969_v3 = vshrl.u32 %v74_v0, 7  ;;  %vm1350_vm1 = vcmask 261120  }
  0x2c   :  { %589 = vmatpush1.bf16.msra.mxu0 %v1579_v8  ;;  %v1575_v12 = vld [vmem:[%s2071_s1 + $0x30] ss:$8 sps:$4 sm:$0xff]   ;;  %v1583_v13 = vld [vmem:[#allocation2 + $0x44] ss:$16 sps:$4 sm:$0xff]   ;;  %v1673_v43 = vld [vmem:[#allocation5] ss:$8 sps:$4 sm:$0xff]  }
  0x2d   :  { %136 = vmatpush1.bf16.msra.mxu1 %v1569_v4  ;;  %590 = vmatprep.subr.bf16.mxu0 %v1580_v10  ;;  %v1576_v14 = vld [vmem:[%s2070_s0] sm:$0xff]   ;;  %v1678_v45 = vld [vmem:[#allocation5 + $0x14] ss:$8 sps:$4 sm:$0xff]   ;;  %v1676_v46 = vld [vmem:[#allocation5 + $0x10] ss:$8 sps:$4 sm:$0xff]   ;;  %v1978_v8 = vsub.s32 1, %v1969_v3 }
  0x2e   :  { %137 = vmatprep.subr.bf16.mxu1 %v1570_v5  ;;  %v1585_v15 = vld [vmem:[#allocation2 + $0x40] ss:$16 sps:$4 sm:$0xff]   ;;  %v1586_v16 = vld [vmem:[#allocation2 + $0x64] ss:$16 sps:$4 sm:$0xff]   ;;  %s1864_s21 = smov [#allocation7]  }
  0x2f   :  { %v1588_v17 = vld [vmem:[#allocation2 + $0x60] ss:$16 sps:$4 sm:$0xff]   ;;  %v1589_v18 = vld [vmem:[#allocation2 + $0x84] ss:$16 sps:$4 sm:$0xff]   ;;  %s1358_s22 = sshll.u32 %s1864_s21, 4  ;;  %s1359_s22 = int_to_ptr.vmem [resolvable:$true] %s1358_s22 }
  0x30   :  { %591 = vmatpush1.bf16.msra.mxu0 %v1582_v11  ;;  %v1591_v19 = vld [vmem:[#allocation2 + $0x80] ss:$16 sps:$4 sm:$0xff]   ;;  %v1592_v20 = vld [vmem:[#allocation2 + $0xa4] ss:$16 sps:$4 sm:$0xff]   ;;  %s1829_s23 = scalar_lea.vmem %s1359_s22, 256  ;;  %p1834_p3 = scmp.lt.s32.totalorder %s1359_s22, %s1359_s22 }
  0x31   :  { %138 = vmatpush1.bf16.msra.mxu1 %v1572_v6  ;;  %592 = vmatprep.subr.bf16.mxu0 %v1583_v13  ;;  %v1594_v21 = vld [vmem:[#allocation2 + $0xa0] ss:$16 sps:$4 sm:$0xff]   ;;  %v1595_v22 = vld [vmem:[#allocation2 + $0xc4] ss:$16 sps:$4 sm:$0xff]   ;;  %v1972_v6 = vsub.s32 0, %v1969_v3  ;;  %p1830_p2 = scmp.ne.s32.totalorder %s1359_s22, %s1829_s23  ;;  %p1835_p4 = scmp.lt.s32.totalorder %s1829_s23, %s1829_s23 }
  0x32   :  { %139 = vmatprep.subr.bf16.mxu1 %v1573_v9  ;;  %v1597_v23 = vld [vmem:[#allocation2 + $0xc0] ss:$16 sps:$4 sm:$0xff]   ;;  %v1598_v24 = vld [vmem:[#allocation2 + $0xe4] ss:$16 sps:$4 sm:$0xff]  }
  0x33   :  { %v1600_v25 = vld [vmem:[#allocation2 + $0xe0] ss:$16 sps:$4 sm:$0xff]   ;;  %v1601_v26 = vld [vmem:[#allocation2 + $0x104] ss:$16 sps:$4 sm:$0xff]   ;;  %p1836_p5 = por %p1835_p4, %p1834_p3 }
  0x34   :  { %593 = vmatpush1.bf16.msra.mxu0 %v1585_v15  ;;  %v1603_v27 = vld [vmem:[#allocation2 + $0x100] ss:$16 sps:$4 sm:$0xff]   ;;  %v1604_v28 = vld [vmem:[#allocation2 + $0x124] ss:$16 sps:$4 sm:$0xff]  }
  0x35   :  { %140 = vmatpush1.bf16.msra.mxu1 %v1575_v12  ;;  %594 = vmatprep.subr.bf16.mxu0 %v1586_v16  ;;  %v1606_v29 = vld [vmem:[#allocation2 + $0x120] ss:$16 sps:$4 sm:$0xff]   ;;  %v1607_v30 = vld [vmem:[#allocation2 + $0x144] ss:$16 sps:$4 sm:$0xff]   ;;  %p1837_p6 = pnand %p1836_p5, %p1830_p2 }
  0x36   :  { %v1609_v31 = vld [vmem:[#allocation2 + $0x140] ss:$16 sps:$4 sm:$0xff]   ;;  %v1610_v32 = vld [vmem:[#allocation2 + $0x164] ss:$16 sps:$4 sm:$0xff]  }
  0x37   :  { %v1612_v33 = vld [vmem:[#allocation2 + $0x160] ss:$16 sps:$4 sm:$0xff]   ;;  %v1613_v34 = vld [vmem:[#allocation2 + $0x184] ss:$16 sps:$4 sm:$0xff]  }
  0x38   :  { %1380 = vmatmul.mubr.msk.bf16.vlgmr.msra.gmra.mrb[0].mxu1 %vm129_vm0, %v1576_v14  ;;  %595 = vmatpush1.bf16.msra.mxu0 %v1588_v17  ;;  %v1615_v35 = vld [vmem:[#allocation2 + $0x180] ss:$16 sps:$4 sm:$0xff]   ;;  %v1616_v36 = vld [vmem:[#allocation2 + $0x1a4] ss:$16 sps:$4 sm:$0xff]  }
  0x39   :  { %596 = vmatprep.subr.bf16.mxu0 %v1589_v18  ;;  %v1618_v37 = vld [vmem:[#allocation2 + $0x1a0] ss:$16 sps:$4 sm:$0xff]   ;;  %v1619_v38 = vld [vmem:[#allocation2 + $0x1c4] ss:$16 sps:$4 sm:$0xff]  }
  0x3a   :  { %v1621_v39 = vld [vmem:[#allocation2 + $0x1c0] ss:$16 sps:$4 sm:$0xff]   ;;  %v1622_v40 = vld [vmem:[#allocation2 + $0x1e4] ss:$16 sps:$4 sm:$0xff]  }
  0x3b   :  { %v1624_v41 = vld [vmem:[#allocation2 + $0x1e0] ss:$16 sps:$4 sm:$0xff]   ;;  %v1675_v44 = vld [vmem:[#allocation5 + $0x4] ss:$8 sps:$4 sm:$0xff]   ;;  %v1684_v49 = vld [vmem:[#allocation5 + $0x34] ss:$8 sps:$4 sm:$0xff]  }
  0x3c   :  { %597 = vmatpush1.bf16.msra.mxu0 %v1591_v19  ;;  %1082 = vmatprep.subr.bf16.mxu1 %v1675_v44  ;;  %v1681_v47 = vld [vmem:[#allocation5 + $0x24] ss:$8 sps:$4 sm:$0xff]   ;;  %v1679_v48 = vld [vmem:[#allocation5 + $0x20] ss:$8 sps:$4 sm:$0xff]   ;;  %v1682_v50 = vld [vmem:[#allocation5 + $0x30] ss:$8 sps:$4 sm:$0xff]  }
  0x3d   :  { %598 = vmatprep.subr.bf16.mxu0 %v1592_v20  ;;  %1083 = vmatpush1.bf16.msra.mxu1 %v1673_v43  ;;  %v1687_v51 = vld [vmem:[#allocation5 + $0x44] ss:$8 sps:$4 sm:$0xff]   ;;  %v1685_v52 = vld [vmem:[#allocation5 + $0x40] ss:$8 sps:$4 sm:$0xff]   ;;  %v1690_v53 = vld [vmem:[#allocation5 + $0x54] ss:$8 sps:$4 sm:$0xff]  }
  0x3e   :  { %1084 = vmatprep.subr.bf16.mxu1 %v1678_v45  ;;  %v1688_v54 = vld [vmem:[#allocation5 + $0x50] ss:$8 sps:$4 sm:$0xff]   ;;  %v1693_v55 = vld [vmem:[#allocation5 + $0x64] ss:$8 sps:$4 sm:$0xff]   ;;  %v1691_v56 = vld [vmem:[#allocation5 + $0x60] ss:$8 sps:$4 sm:$0xff]  }
  0x3f   :  { %v1696_v57 = vld [vmem:[#allocation5 + $0x74] ss:$8 sps:$4 sm:$0xff]   ;;  %v1694_v58 = vld [vmem:[#allocation5 + $0x70] ss:$8 sps:$4 sm:$0xff]   ;;  %v1699_v59 = vld [vmem:[#allocation5 + $0x84] ss:$8 sps:$4 sm:$0xff]  }
  0x40   :  { %599 = vmatpush1.bf16.msra.mxu0 %v1594_v21  ;;  %v1697_v60 = vld [vmem:[#allocation5 + $0x80] ss:$8 sps:$4 sm:$0xff]   ;;  %v1702_v61 = vld [vmem:[#allocation5 + $0x94] ss:$8 sps:$4 sm:$0xff]   ;;  %v1700_v62 = vld [vmem:[#allocation5 + $0x90] ss:$8 sps:$4 sm:$0xff]  }
  0x41   :  { %600 = vmatprep.subr.bf16.mxu0 %v1595_v22  ;;  %1085 = vmatpush1.bf16.msra.mxu1 %v1676_v46  ;;  %v1705_v63 = vld [vmem:[#allocation5 + $0xa4] ss:$8 sps:$4 sm:$0xff]   ;;  %v1703_v1 = vld [vmem:[#allocation5 + $0xa0] ss:$8 sps:$4 sm:$0xff]   ;;  %v1708_v2 = vld [vmem:[#allocation5 + $0xb4] ss:$8 sps:$4 sm:$0xff]  }
  0x42   :  { %1086 = vmatprep.subr.bf16.mxu1 %v1681_v47  ;;  %v1706_v4 = vld [vmem:[#allocation5 + $0xb0] ss:$8 sps:$4 sm:$0xff]   ;;  %v1711_v5 = vld [vmem:[#allocation5 + $0xc4] ss:$8 sps:$4 sm:$0xff]   ;;  %v72_v7 = vld [vmem:[%s2072_s2] sm:$0x3] }
  0x43   :  { %v1709_v9 = vld [vmem:[#allocation5 + $0xc0] ss:$8 sps:$4 sm:$0xff]   ;;  %v1714_v10 = vld [vmem:[#allocation5 + $0xd4] ss:$8 sps:$4 sm:$0xff]   ;;  %v77_v11 = vrot.slane %v72_v7, %v1972_v6  ;;  %v81_v12 = vrot.slane %v72_v7, %v1978_v8  ;;  %v1712_v13 = vld [vmem:[#allocation5 + $0xd0] ss:$8 sps:$4 sm:$0xff]  }
  0x44   :  { %601 = vmatpush1.bf16.msra.mxu0 %v1597_v23  ;;  %v1651_v43 = vld [vmem:[#allocation2 + $0x10c] ss:$16 sps:$4 sm:$0xff]   ;;  %v1649_v44 = vld [vmem:[#allocation2 + $0x108] ss:$16 sps:$4 sm:$0xff]   ;;  %v1769_v0 = vld [vmem:[%s2077_s7 + $0x40] sm:$0xff]  }
  0x45   :  { %602 = vmatprep.subr.bf16.mxu0 %v1598_v24  ;;  %1087 = vmatpush1.bf16.msra.mxu1 %v1679_v48  ;;  %v1654_v45 = vld [vmem:[#allocation2 + $0x12c] ss:$16 sps:$4 sm:$0xff]   ;;  %v1652_v46 = vld [vmem:[#allocation2 + $0x128] ss:$16 sps:$4 sm:$0xff]   ;;  %v1774_v7 = vld [vmem:[%s2077_s7 + $0x10] sm:$0xff]  }
  0x46   :  { %1088 = vmatprep.subr.bf16.mxu1 %v1684_v49  ;;  %v1657_v47 = vld [vmem:[#allocation2 + $0x14c] ss:$16 sps:$4 sm:$0xff]   ;;  %v1655_v48 = vld [vmem:[#allocation2 + $0x148] ss:$16 sps:$4 sm:$0xff]  }
  0x47   :  { %v1660_v49 = vld [vmem:[#allocation2 + $0x16c] ss:$16 sps:$4 sm:$0xff]  }
  0x48   :  { %603 = vmatpush1.bf16.msra.mxu0 %v1600_v25 }
  0x49   :  { %604 = vmatprep.subr.bf16.mxu0 %v1601_v26  ;;  %1089 = vmatpush1.bf16.msra.mxu1 %v1682_v50  ;;  %v1658_v50 = vld [vmem:[#allocation2 + $0x168] ss:$16 sps:$4 sm:$0xff]  }
  0x4a   :  { %1090 = vmatprep.subr.bf16.mxu1 %v1687_v51  ;;  %v1663_v51 = vld [vmem:[#allocation2 + $0x18c] ss:$16 sps:$4 sm:$0xff]  }
  0x4c   :  { %605 = vmatpush1.bf16.msra.mxu0 %v1603_v27 }
  0x4d   :  { %606 = vmatprep.subr.bf16.mxu0 %v1604_v28  ;;  %1091 = vmatpush1.bf16.msra.mxu1 %v1685_v52  ;;  %v1625_v28 = vld [vmem:[#allocation2 + $0x8] ss:$16 sps:$4 sm:$0xff]  }
  0x4e   :  { %1092 = vmatprep.subr.bf16.mxu1 %v1690_v53  ;;  %v1661_v52 = vld [vmem:[#allocation2 + $0x188] ss:$16 sps:$4 sm:$0xff]   ;;  %v1666_v53 = vld [vmem:[#allocation2 + $0x1ac] ss:$16 sps:$4 sm:$0xff]  }
  0x50   :  { %607 = vmatpush1.bf16.msra.mxu0 %v1606_v29  ;;  %v1630_v29 = vld [vmem:[#allocation2 + $0x2c] ss:$16 sps:$4 sm:$0xff]  }
  0x51   :  { %608 = vmatprep.subr.bf16.mxu0 %v1607_v30  ;;  %1093 = vmatpush1.bf16.msra.mxu1 %v1688_v54  ;;  %v1628_v30 = vld [vmem:[#allocation2 + $0x28] ss:$16 sps:$4 sm:$0xff]  }
  0x52   :  { %1094 = vmatprep.subr.bf16.mxu1 %v1693_v55  ;;  %v1664_v54 = vld [vmem:[#allocation2 + $0x1a8] ss:$16 sps:$4 sm:$0xff]   ;;  %v1669_v55 = vld [vmem:[#allocation2 + $0x1cc] ss:$16 sps:$4 sm:$0xff]  }
  0x54   :  { %609 = vmatpush1.bf16.msra.mxu0 %v1609_v31  ;;  %v1633_v31 = vld [vmem:[#allocation2 + $0x4c] ss:$16 sps:$4 sm:$0xff]  }
  0x55   :  { %610 = vmatprep.subr.bf16.mxu0 %v1610_v32  ;;  %1095 = vmatpush1.bf16.msra.mxu1 %v1691_v56  ;;  %v1631_v32 = vld [vmem:[#allocation2 + $0x48] ss:$16 sps:$4 sm:$0xff]  }
  0x56   :  { %1096 = vmatprep.subr.bf16.mxu1 %v1696_v57  ;;  %v1667_v56 = vld [vmem:[#allocation2 + $0x1c8] ss:$16 sps:$4 sm:$0xff]   ;;  %v1672_v57 = vld [vmem:[#allocation2 + $0x1ec] ss:$16 sps:$4 sm:$0xff]  }
  0x58   :  { %611 = vmatpush1.bf16.msra.mxu0 %v1612_v33  ;;  %v1636_v33 = vld [vmem:[#allocation2 + $0x6c] ss:$16 sps:$4 sm:$0xff]  }
  0x59   :  { %612 = vmatprep.subr.bf16.mxu0 %v1613_v34  ;;  %1097 = vmatpush1.bf16.msra.mxu1 %v1694_v58  ;;  %v1634_v34 = vld [vmem:[#allocation2 + $0x68] ss:$16 sps:$4 sm:$0xff]  }
  0x5a   :  { %1098 = vmatprep.subr.bf16.mxu1 %v1699_v59  ;;  %v1670_v58 = vld [vmem:[#allocation2 + $0x1e8] ss:$16 sps:$4 sm:$0xff]   ;;  %v1717_v59 = vld [vmem:[#allocation5 + $0xe4] ss:$8 sps:$4 sm:$0xff]  }
  0x5c   :  { %613 = vmatpush1.bf16.msra.mxu0 %v1615_v35  ;;  %v1639_v35 = vld [vmem:[#allocation2 + $0x8c] ss:$16 sps:$4 sm:$0xff]  }
  0x5d   :  { %614 = vmatprep.subr.bf16.mxu0 %v1616_v36  ;;  %1099 = vmatpush1.bf16.msra.mxu1 %v1697_v60  ;;  %v1637_v36 = vld [vmem:[#allocation2 + $0x88] ss:$16 sps:$4 sm:$0xff]  }
  0x5e   :  { %1100 = vmatprep.subr.bf16.mxu1 %v1702_v61  ;;  %v1715_v60 = vld [vmem:[#allocation5 + $0xe0] ss:$8 sps:$4 sm:$0xff]   ;;  %v1720_v61 = vld [vmem:[#allocation5 + $0xf4] ss:$8 sps:$4 sm:$0xff]  }
  0x60   :  { %615 = vmatpush1.bf16.msra.mxu0 %v1618_v37  ;;  %v1642_v37 = vld [vmem:[#allocation2 + $0xac] ss:$16 sps:$4 sm:$0xff]  }
  0x61   :  { %616 = vmatprep.subr.bf16.mxu0 %v1619_v38  ;;  %1101 = vmatpush1.bf16.msra.mxu1 %v1700_v62  ;;  %v1640_v38 = vld [vmem:[#allocation2 + $0xa8] ss:$16 sps:$4 sm:$0xff]  }
  0x62   :  { %1102 = vmatprep.subr.bf16.mxu1 %v1705_v63  ;;  %v1718_v62 = vld [vmem:[#allocation5 + $0xf0] ss:$8 sps:$4 sm:$0xff]   ;;  %v1723_v63 = vld [vmem:[#allocation5 + $0x104] ss:$8 sps:$4 sm:$0xff]  }
  0x64   :  { %617 = vmatpush1.bf16.msra.mxu0 %v1621_v39  ;;  %v1645_v39 = vld [vmem:[#allocation2 + $0xcc] ss:$16 sps:$4 sm:$0xff]  }
  0x65   :  { %618 = vmatprep.subr.bf16.mxu0 %v1622_v40  ;;  %1103 = vmatpush1.bf16.msra.mxu1 %v1703_v1  ;;  %v1643_v40 = vld [vmem:[#allocation2 + $0xc8] ss:$16 sps:$4 sm:$0xff]   ;;  %v1770_v1 = vld [vmem:[%s2077_s7] sm:$0xff]  }
  0x66   :  { %1104 = vmatprep.subr.bf16.mxu1 %v1708_v2  ;;  %v1771_v2 = vld [vmem:[%s2077_s7 + $0x48] sm:$0xff]  }
  0x68   :  { %619 = vmatpush1.bf16.msra.mxu0 %v1624_v41  ;;  %v1648_v41 = vld [vmem:[#allocation2 + $0xec] ss:$16 sps:$4 sm:$0xff]  }
  0x69   :  { %631 = vmatprep.subr.bf16.mxu0 %v1627_v42  ;;  %1105 = vmatpush1.bf16.msra.mxu1 %v1706_v4  ;;  %v1646_v42 = vld [vmem:[#allocation2 + $0xe8] ss:$16 sps:$4 sm:$0xff]  }
  0x6a   :  { %1106 = vmatprep.subr.bf16.mxu1 %v1711_v5  ;;  %v1772_v4 = vld [vmem:[%s2077_s7 + $0x8] sm:$0xff]   ;;  %v1773_v5 = vld [vmem:[%s2077_s7 + $0x50] sm:$0xff]  }
  0x6d   :  { %1107 = vmatpush1.bf16.msra.mxu1 %v1709_v9  ;;  %v1775_v9 = vld [vmem:[%s2077_s7 + $0x58] sm:$0xff]  }
  0x6e   :  { %1108 = vmatprep.subr.bf16.mxu1 %v1714_v10  ;;  %v1776_v10 = vld [vmem:[%s2077_s7 + $0x18] sm:$0xff]  }
  0x71   :  { %1109 = vmatpush1.bf16.msra.mxu1 %v1712_v13  ;;  %v1779_v13 = vld [vmem:[%s2077_s7 + $0x68] sm:$0xff]  }
  0x72   :  { %1110 = vmatprep.subr.bf16.mxu1 %v1717_v59  ;;  %v1760_v59 = vld [vmem:[#allocation5 + $0x1d0] ss:$8 sps:$4 sm:$0xff]  }
  0x75   :  { %1111 = vmatpush1.bf16.msra.mxu1 %v1715_v60 }
  0x76   :  { %1112 = vmatprep.subr.bf16.mxu1 %v1720_v61  ;;  %v1765_v61 = vld [vmem:[#allocation5 + $0x1e4] ss:$8 sps:$4 sm:$0xff]  }
  0x79   :  { %1113 = vmatpush1.bf16.msra.mxu1 %v1718_v62 }
  0x7a   :  { %1125 = vmatprep.subr.bf16.mxu1 %v1723_v63 }
 0x10b   :  { %v167_v14 = vpop.f32.mrb[0].mxu1 }
 0x10c   :  { %v168_v15 = vadd.f32 %v167_v14, %v77_v11  ;;  %v169_v16 = vpop.f32.mrb[1].mxu1  ;;  %v2022_v14 = vld [vmem:[%s2074_s4] sm:$0xf] }
 0x10d   :  { %v170_v17 = vadd.f32 %v169_v16, %v81_v12  ;;  %v171_v18 = vpop.f32.mrb[2].mxu1  ;;  %v255_v16 = vrot.slane %v2022_v14, %v1978_v8 }
 0x10e   :  { %v172_v19 = vadd.f32 %v171_v18, %v77_v11  ;;  %v173_v20 = vpop.f32.mrb[3].mxu1  ;;  %v176_v22 = vmax.f32 %v168_v15, 0.0  ;;  %v1777_v11 = vld [vmem:[%s2077_s7 + $0x60] sm:$0xff]   ;;  %v251_v15 = vrot.slane %v2022_v14, %v1972_v6 }
 0x10f   :  { %v174_v21 = vadd.f32 %v173_v20, %v81_v12  ;;  %v177_v24 = vmax.f32 %v170_v17, 0.0  ;;  %v1778_v12 = vld [vmem:[%s2077_s7 + $0x20] sm:$0xff]  }
 0x110   :  { %v178_v23 = vmax.f32 %v172_v19, 0.0 }
 0x111   :  { %v179_v25 = vmax.f32 %v174_v21, 0.0 }
 0x112   :  { %v1982_v26 = vpack.c.bf16 %v178_v23, %v176_v22 }
 0x113   :  { %v181_v27 = vpack.c.bf16 %v179_v25, %v177_v24 }
 0x115   :  { %620 = vmatprep.mubr.bf16.mxu0 %v181_v27 }
 0x116   :  { %621 = vmatmul.mubr.bf16.vlgmr.msra.gmra.mrb[0].mxu0 %v1982_v26 }
 0x117   :  { %632 = vmatpush1.bf16.msra.mxu0 %v1625_v28  ;;  %663 = vmatprep.mubr.bf16.mxu0 %v181_v27 }
 0x118   :  { %633 = vmatprep.subr.bf16.mxu0 %v1630_v29 }
 0x11b   :  { %634 = vmatpush1.bf16.msra.mxu0 %v1628_v30 }
 0x11c   :  { %635 = vmatprep.subr.bf16.mxu0 %v1633_v31  ;;  %v1721_v31 = vld [vmem:[#allocation5 + $0x100] ss:$8 sps:$4 sm:$0xff]  }
 0x11f   :  { %636 = vmatpush1.bf16.msra.mxu0 %v1631_v32  ;;  %v1726_v32 = vld [vmem:[#allocation5 + $0x114] ss:$8 sps:$4 sm:$0xff]  }
 0x120   :  { %637 = vmatprep.subr.bf16.mxu0 %v1636_v33  ;;  %v1724_v33 = vld [vmem:[#allocation5 + $0x110] ss:$8 sps:$4 sm:$0xff]  }
 0x123   :  { %638 = vmatpush1.bf16.msra.mxu0 %v1634_v34  ;;  %v1729_v34 = vld [vmem:[#allocation5 + $0x124] ss:$8 sps:$4 sm:$0xff]  }
 0x124   :  { %639 = vmatprep.subr.bf16.mxu0 %v1639_v35  ;;  %v1727_v35 = vld [vmem:[#allocation5 + $0x120] ss:$8 sps:$4 sm:$0xff]  }
 0x127   :  { %640 = vmatpush1.bf16.msra.mxu0 %v1637_v36  ;;  %v1732_v36 = vld [vmem:[#allocation5 + $0x134] ss:$8 sps:$4 sm:$0xff]  }
 0x128   :  { %641 = vmatprep.subr.bf16.mxu0 %v1642_v37  ;;  %v1730_v37 = vld [vmem:[#allocation5 + $0x130] ss:$8 sps:$4 sm:$0xff]  }
 0x12b   :  { %642 = vmatpush1.bf16.msra.mxu0 %v1640_v38  ;;  %v1735_v38 = vld [vmem:[#allocation5 + $0x144] ss:$8 sps:$4 sm:$0xff]  }
 0x12c   :  { %643 = vmatprep.subr.bf16.mxu0 %v1645_v39  ;;  %v1733_v39 = vld [vmem:[#allocation5 + $0x140] ss:$8 sps:$4 sm:$0xff]  }
 0x12f   :  { %644 = vmatpush1.bf16.msra.mxu0 %v1643_v40  ;;  %v1738_v40 = vld [vmem:[#allocation5 + $0x154] ss:$8 sps:$4 sm:$0xff]  }
 0x130   :  { %645 = vmatprep.subr.bf16.mxu0 %v1648_v41  ;;  %v1736_v41 = vld [vmem:[#allocation5 + $0x150] ss:$8 sps:$4 sm:$0xff]  }
 0x133   :  { %646 = vmatpush1.bf16.msra.mxu0 %v1646_v42  ;;  %v1741_v42 = vld [vmem:[#allocation5 + $0x164] ss:$8 sps:$4 sm:$0xff]  }
 0x134   :  { %647 = vmatprep.subr.bf16.mxu0 %v1651_v43  ;;  %v1739_v43 = vld [vmem:[#allocation5 + $0x160] ss:$8 sps:$4 sm:$0xff]  }
 0x137   :  { %648 = vmatpush1.bf16.msra.mxu0 %v1649_v44  ;;  %v1744_v44 = vld [vmem:[#allocation5 + $0x174] ss:$8 sps:$4 sm:$0xff]  }
 0x138   :  { %649 = vmatprep.subr.bf16.mxu0 %v1654_v45  ;;  %v1742_v45 = vld [vmem:[#allocation5 + $0x170] ss:$8 sps:$4 sm:$0xff]  }
 0x13b   :  { %650 = vmatpush1.bf16.msra.mxu0 %v1652_v46  ;;  %v1747_v46 = vld [vmem:[#allocation5 + $0x184] ss:$8 sps:$4 sm:$0xff]  }
 0x13c   :  { %651 = vmatprep.subr.bf16.mxu0 %v1657_v47  ;;  %v1745_v47 = vld [vmem:[#allocation5 + $0x180] ss:$8 sps:$4 sm:$0xff]  }
 0x13f   :  { %652 = vmatpush1.bf16.msra.mxu0 %v1655_v48  ;;  %v1750_v48 = vld [vmem:[#allocation5 + $0x194] ss:$8 sps:$4 sm:$0xff]  }
 0x140   :  { %653 = vmatprep.subr.bf16.mxu0 %v1660_v49  ;;  %v1748_v49 = vld [vmem:[#allocation5 + $0x190] ss:$8 sps:$4 sm:$0xff]  }
 0x143   :  { %654 = vmatpush1.bf16.msra.mxu0 %v1658_v50  ;;  %v1753_v50 = vld [vmem:[#allocation5 + $0x1a4] ss:$8 sps:$4 sm:$0xff]  }
 0x144   :  { %655 = vmatprep.subr.bf16.mxu0 %v1663_v51  ;;  %v1751_v51 = vld [vmem:[#allocation5 + $0x1a0] ss:$8 sps:$4 sm:$0xff]  }
 0x147   :  { %656 = vmatpush1.bf16.msra.mxu0 %v1661_v52  ;;  %v1756_v52 = vld [vmem:[#allocation5 + $0x1b4] ss:$8 sps:$4 sm:$0xff]  }
 0x148   :  { %657 = vmatprep.subr.bf16.mxu0 %v1666_v53  ;;  %v1754_v53 = vld [vmem:[#allocation5 + $0x1b0] ss:$8 sps:$4 sm:$0xff]  }
 0x14b   :  { %658 = vmatpush1.bf16.msra.mxu0 %v1664_v54  ;;  %v1759_v54 = vld [vmem:[#allocation5 + $0x1c4] ss:$8 sps:$4 sm:$0xff]  }
 0x14c   :  { %659 = vmatprep.subr.bf16.mxu0 %v1669_v55  ;;  %v1757_v55 = vld [vmem:[#allocation5 + $0x1c0] ss:$8 sps:$4 sm:$0xff]  }
 0x14f   :  { %660 = vmatpush1.bf16.msra.mxu0 %v1667_v56  ;;  %v1762_v56 = vld [vmem:[#allocation5 + $0x1d4] ss:$8 sps:$4 sm:$0xff]  }
 0x150   :  { %661 = vmatprep.subr.bf16.mxu0 %v1672_v57  ;;  %v258_v57 = vsub.s32 2, %v1969_v3 }
 0x152   :  { %v259_v60 = vrot.slane %v2022_v14, %v258_v57 }
 0x153   :  { %662 = vmatpush1.bf16.msra.mxu0 %v1670_v58  ;;  %v262_v58 = vsub.s32 3, %v1969_v3 }
 0x154   :  { %1526 = vmatprep.subr.bf16.mxu0 %v1769_v0  ;;  %v1763_v0 = vld [vmem:[#allocation5 + $0x1e0] ss:$8 sps:$4 sm:$0xff]  }
 0x155   :  { %v263_v62 = vrot.slane %v2022_v14, %v262_v58 }
 0x156   :  { %664 = vmatmul.mubr.bf16.vlgmr.msra.gmra.mrb[4].mxu0 %v1982_v26 }
 0x157   :  { %1527 = vmatpush3.bf16.msra.mxu0 %v1770_v1 }
 0x158   :  { %1528 = vmatprep.subr.bf16.mxu0 %v1771_v2 }
 0x15b   :  { %1529 = vmatpush3.bf16.msra.mxu0 %v1772_v4  ;;  %v1768_v4 = vld [vmem:[#allocation5 + $0x1f4] ss:$8 sps:$4 sm:$0xff]  }
 0x15c   :  { %1530 = vmatprep.subr.bf16.mxu0 %v1773_v5 }
 0x15f   :  { %1531 = vmatpush3.bf16.msra.mxu0 %v1774_v7 }
 0x160   :  { %1532 = vmatprep.subr.bf16.mxu0 %v1775_v9 }
 0x163   :  { %1533 = vmatpush3.bf16.msra.mxu0 %v1776_v10 }
 0x164   :  { %1534 = vmatprep.subr.bf16.mxu0 %v1777_v11  ;;  %v1766_v11 = vld [vmem:[#allocation5 + $0x1f0] ss:$8 sps:$4 sm:$0xff]  }
 0x167   :  { %1535 = vmatpush3.bf16.msra.mxu0 %v1778_v12 }
 0x168   :  { %1536 = vmatprep.subr.bf16.mxu0 %v1779_v13 }
 0x1e9   :  { %v622_v17 = vpop.f32.mrb[0].mxu0 }
 0x1ea   :  { %v623_v18 = vadd.f32 %v622_v17, %v251_v15  ;;  %v624_v19 = vpop.f32.mrb[1].mxu0 }
 0x1eb   :  { %v625_v20 = vadd.f32 %v624_v19, %v255_v16  ;;  %v626_v21 = vpop.f32.mrb[2].mxu0  ;;  %v1781_v19 = vld [vmem:[%s2077_s7 + $0x70] sm:$0xff]  }
 0x1ec   :  { %v627_v22 = vadd.f32 %v626_v21, %v251_v15  ;;  %v628_v23 = vpop.f32.mrb[3].mxu0  ;;  %v674_v25 = vmax.f32 %v623_v18, 0.0  ;;  %v1780_v18 = vld [vmem:[%s2077_s7 + $0x28] sm:$0xff]   ;;  %v1783_v21 = vld [vmem:[%s2077_s7 + $0x78] sm:$0xff]  }
 0x1ed   :  { %v629_v24 = vadd.f32 %v628_v23, %v255_v16  ;;  %v675_v27 = vmax.f32 %v625_v20, 0.0  ;;  %1537 = vmatpush3.bf16.msra.mxu0 %v1780_v18  ;;  %v1782_v20 = vld [vmem:[%s2077_s7 + $0x30] sm:$0xff]   ;;  %v750_v23 = vld [vmem:[%s2076_s6] sm:$0x3] }
 0x1ee   :  { %v678_v26 = vmax.f32 %v627_v22, 0.0  ;;  %1538 = vmatprep.subr.bf16.mxu0 %v1781_v19  ;;  %v1784_v22 = vld [vmem:[%s2077_s7 + $0x38] sm:$0xff]  }
 0x1ef   :  { %v679_v28 = vmax.f32 %v629_v24, 0.0  ;;  %v755_v24 = vrot.slane %v750_v23, %v1972_v6  ;;  %v1509_v6 = vld [vmem:[%s2078_s8] ss:$0 sm:$0xff] }
 0x1f0   :  { %v682_v29 = vpack.c.bf16 %v678_v26, %v674_v25  ;;  %v759_v25 = vrot.slane %v750_v23, %v1978_v8 }
 0x1f1   :  { %v683_v30 = vpack.c.bf16 %v679_v28, %v675_v27  ;;  %1539 = vmatpush3.bf16.msra.mxu0 %v1782_v20 }
 0x1f2   :  { %1540 = vmatprep.subr.bf16.mxu0 %v1783_v21 }
 0x1f3   :  { %1114 = vmatprep.mubr.bf16.mxu1 %v683_v30 }
 0x1f4   :  { %1115 = vmatmul.mubr.bf16.vlgmr.msra.gmra.mrb[4].mxu1 %v682_v29 }
 0x1f5   :  { %1126 = vmatpush1.bf16.msra.mxu1 %v1721_v31  ;;  %1541 = vmatpush3.bf16.msra.mxu0 %v1784_v22 }
 0x1f6   :  { %1127 = vmatprep.subr.bf16.mxu1 %v1726_v32 }
 0x1f9   :  { %1128 = vmatpush1.bf16.msra.mxu1 %v1724_v33 }
 0x1fa   :  { %1129 = vmatprep.subr.bf16.mxu1 %v1729_v34 }
 0x1fd   :  { %1130 = vmatpush1.bf16.msra.mxu1 %v1727_v35 }
 0x1fe   :  { %1131 = vmatprep.subr.bf16.mxu1 %v1732_v36 }
 0x201   :  { %1132 = vmatpush1.bf16.msra.mxu1 %v1730_v37 }
 0x202   :  { %1133 = vmatprep.subr.bf16.mxu1 %v1735_v38 }
 0x205   :  { %1134 = vmatpush1.bf16.msra.mxu1 %v1733_v39 }
 0x206   :  { %1135 = vmatprep.subr.bf16.mxu1 %v1738_v40 }
 0x209   :  { %1136 = vmatpush1.bf16.msra.mxu1 %v1736_v41 }
 0x20a   :  { %1137 = vmatprep.subr.bf16.mxu1 %v1741_v42 }
 0x20d   :  { %1138 = vmatpush1.bf16.msra.mxu1 %v1739_v43 }
 0x20e   :  { %1139 = vmatprep.subr.bf16.mxu1 %v1744_v44 }
 0x211   :  { %1140 = vmatpush1.bf16.msra.mxu1 %v1742_v45 }
 0x212   :  { %1141 = vmatprep.subr.bf16.mxu1 %v1747_v46 }
 0x215   :  { %1142 = vmatpush1.bf16.msra.mxu1 %v1745_v47 }
 0x216   :  { %1143 = vmatprep.subr.bf16.mxu1 %v1750_v48 }
 0x219   :  { %1144 = vmatpush1.bf16.msra.mxu1 %v1748_v49 }
 0x21a   :  { %1145 = vmatprep.subr.bf16.mxu1 %v1753_v50 }
 0x21d   :  { %1146 = vmatpush1.bf16.msra.mxu1 %v1751_v51 }
 0x21e   :  { %1147 = vmatprep.subr.bf16.mxu1 %v1756_v52 }
 0x221   :  { %1148 = vmatpush1.bf16.msra.mxu1 %v1754_v53 }
 0x222   :  { %1149 = vmatprep.subr.bf16.mxu1 %v1759_v54 }
 0x225   :  { %1150 = vmatpush1.bf16.msra.mxu1 %v1757_v55 }
 0x226   :  { %1151 = vmatprep.subr.bf16.mxu1 %v1762_v56 }
 0x229   :  { %v665_v63 = vpop.f32.mrb[4].mxu0  ;;  %1152 = vmatpush1.bf16.msra.mxu1 %v1760_v59 }
 0x22a   :  { %v666_v1 = vadd.f32 %v665_v63, %v259_v60  ;;  %v667_v2 = vpop.f32.mrb[5].mxu0  ;;  %1153 = vmatprep.subr.bf16.mxu1 %v1765_v61 }
 0x22b   :  { %v668_v5 = vadd.f32 %v667_v2, %v263_v62  ;;  %v669_v7 = vpop.f32.mrb[6].mxu0 }
 0x22c   :  { %v670_v9 = vadd.f32 %v669_v7, %v259_v60  ;;  %v671_v10 = vpop.f32.mrb[7].mxu0  ;;  %v676_v12 = vmax.f32 %v666_v1, 0.0 }
 0x22d   :  { %v672_v3 = vadd.f32 %v671_v10, %v263_v62  ;;  %1154 = vmatpush1.bf16.msra.mxu1 %v1763_v0  ;;  %v677_v15 = vmax.f32 %v668_v5, 0.0 }
 0x22e   :  { %v680_v13 = vmax.f32 %v670_v9, 0.0  ;;  %1155 = vmatprep.subr.bf16.mxu1 %v1768_v4 }
 0x22f   :  { %v681_v16 = vmax.f32 %v672_v3, 0.0 }
 0x230   :  { %v684_v14 = vpack.c.bf16 %v680_v13, %v676_v12 }
 0x231   :  { %v685_v17 = vpack.c.bf16 %v681_v16, %v677_v15  ;;  %1156 = vmatpush1.bf16.msra.mxu1 %v1766_v11 }
 0x233   :  { %1157 = vmatprep.mubr.bf16.mxu1 %v685_v17 }
 0x234   :  { %1158 = vmatmul.mubr.bf16.vlgmr.msra.gmra.mrb[4].mxu1 %v684_v14 }
 0x307   :  { %v1159_v26 = vpop.f32.mrb[4].mxu1 }
 0x308   :  { %v1548_v27 = vadd.f32 %v1159_v26, %v755_v24  ;;  %v1161_v28 = vpop.f32.mrb[5].mxu1 }
 0x309   :  { %v1549_v29 = vadd.f32 %v1161_v28, %v759_v25  ;;  %v1163_v30 = vpop.f32.mrb[6].mxu1 }
 0x30a   :  { %v1550_v31 = vadd.f32 %v1163_v30, %v755_v24  ;;  %v1165_v32 = vpop.f32.mrb[7].mxu1  ;;  %v1168_v34 = vmax.f32 %v1548_v27, 0.0 }
 0x30b   :  { %v1551_v33 = vadd.f32 %v1165_v32, %v759_v25  ;;  %v1169_v36 = vmax.f32 %v1549_v29, 0.0 }
 0x30c   :  { %v1170_v35 = vmax.f32 %v1550_v31, 0.0 }
 0x30d   :  { %v1171_v37 = vmax.f32 %v1551_v33, 0.0 }
 0x30e   :  { %v1172_v38 = vpack.c.bf16 %v1170_v35, %v1168_v34 }
 0x30f   :  { %v1173_v39 = vpack.c.bf16 %v1171_v37, %v1169_v36 }
 0x311   :  { %1341 = vmatprep.mubr.bf16.mxu0 %v1173_v39 }
 0x312   :  { %1342 = vmatmul.mubr.bf16.vlgmr.msra.gmra.mrb[8].mxu0 %v1172_v38 }
 0x3e5   :  { %v1542_v40 = vpop.f32.mrb[8].mxu0 }
 0x3e6   :  { %v1543_v8 = vpop.f32.mrb[9].mxu0 }
 0x3e7   :  { %v1544_v41 = vadd.f32 %v1543_v8, %v1542_v40  ;;  %v1545_v42 = vpop.f32.mrb[10].mxu0 }
 0x3e8   :  { %v1546_v43 = vpop.f32.mrb[11].mxu0 }
 0x3e9   :  { %v1344_v44 = vadd.f32 %v1544_v41, %v1509_v6  ;;  %v1547_v45 = vadd.f32 %v1546_v43, %v1545_v42 }
 0x3eb   :  { %v1347_v46 = vadd.f32 %v1547_v45, %v1509_v6  ;;  %1351 = vst.msk [vmem:[#allocation7] sm:$0xff] %vm1350_vm1, %v1344_v44 }
 0x3ed   :  { %1352 = vst.msk [vmem:[#allocation7 + $0x8] sm:$0xff] %vm1350_vm1, %v1347_v46 }
 0x3ee   :  { %1840 = shalt.err (!%p1837_p6)
}
 0x3ef   :  { %s1841_s25 = scalar_lea.hbm %s2079_s9, 256 }
 0x3f0   :  { %p1842_p7 = scmp.ne.s32.totalorder %s2079_s9, %s1841_s25  ;;  %p1845_p8 = scmp.lt.u32.totalorder %s1841_s25, %s2079_s9 }
 0x3f2   :  { %p1847_p9 = pnand %p1845_p8, %p1842_p7 }
 0x3f4   :  { %1850 = shalt.err (!%p1847_p9)
}
 0x3f5   :  { %1364 = dma.vmem_to_hbm [thread:$0]  %s1359_s22, 256, %s2079_s9, [#allocation4], %s1861_s3, %s1861_s3, %s1862_s10  }
 0x3f6   :  { %1855 = dma.done.wait [#allocation4], 256  }
 0x3f7   :  { %1856 = vsyncadd [#allocation4], 4294967040 }
 0x3f8   :  { %1368 = vsyncpa [#allocation3], 1 }
 0x3f9   :  { %1369 = vsyncpa [#allocation6], 1 }
 0x3fa   :  { %1370 = vsyncpa [#allocation4], 1 }

</bundles_post_ra>
